<compile_context>
chip_gen: v7x
topology: tpu7x:2x2x1
jax: 0.10.0
libtpu: 0.0.40
codegen_flags: <defaults>
</compile_context>

<pallas_src>
import functools

import jax
import jax.numpy as jnp
from jax.experimental import pallas as pl
from jax.experimental.pallas import tpu as pltpu

_LANE = 128


def _focal_kernel(logit_ref, target_ref, out_ref, *, num_class, gamma, smooth,
                  hw_total, block_rows, need_mask):
    # logit_ref : (C, bs, 128)  (batch dim squeezed)   float32 or bfloat16
    # target_ref: (bs, 128)     int32
    # out_ref   : (bs, 128)     float32 accumulator, resident across the
    #                           innermost ("arbitrary") grid axis
    ri = pl.program_id(2)

    @pl.when(ri == 0)
    def _init():
        out_ref[...] = jnp.zeros_like(out_ref)

    tgt = target_ref[...]                                     # (bs, 128) int32

    # Label-smoothing weights (C == 1 would divide by zero in the reference).
    lo = jnp.float32(smooth / (num_class - 1)) if num_class > 1 else jnp.float32(0.0)
    hi = jnp.float32(1.0 - smooth)

    # Class reduce: unrolled loop over dense (bs,128) planes.  Compare against
    # a scalar class id per plane -> pure VPU, no class iota, no XLU reduce.
    pt = jnp.full(tgt.shape, smooth, dtype=jnp.float32)
    for c in range(num_class):
        w = jnp.where(tgt == c, hi, lo)
        pt = pt + w * logit_ref[c].astype(jnp.float32)

    logpt = jnp.log(pt)                     # only transcendental in the hot loop
    om = 1.0 - pt

    g = float(gamma)
    if g == 2.0:                            # default: square on the VPU, no pow
        focal = om * om
    elif g.is_integer() and g >= 0.0:
        focal = jnp.ones_like(om)
        for _ in range(int(g)):
            focal = focal * om
    else:
        # clamp base at 0 so exp(g*log(x)) lowering can't see a negative base
        focal = jnp.power(jnp.maximum(om, 0.0), jnp.float32(g))

    # TODO(synk): alpha != None (per-class weights / balance_index) not
    # implemented; module default alpha=None -> weight 1 per pixel.
    loss = -focal * logpt                                     # (bs, 128)

    if need_mask:
        # Only the last pixel block can contain padded lanes / out-of-range
        # rows; gate the mask there so every other step pays nothing.
        ro = pl.program_id(1)
        g_in = pl.num_programs(2)
        is_last = jnp.logical_and(ro == pl.num_programs(1) - 1, ri == g_in - 1)

        @pl.when(is_last)
        def _masked_acc():
            rblk = ro * g_in + ri
            sub = jax.lax.broadcasted_iota(jnp.int32, tgt.shape, 0)
            lane = jax.lax.broadcasted_iota(jnp.int32, tgt.shape, 1)
            pix = (rblk * block_rows + sub) * _LANE + lane
            # select (not multiply): NaN/Inf from garbage block rows is dropped
            out_ref[...] += jnp.where(pix < hw_total, loss, jnp.float32(0.0))

        @pl.when(jnp.logical_not(is_last))
        def _plain_acc():
            out_ref[...] += loss
    else:
        out_ref[...] += loss


def focal_loss(logit_nchw, target, *, gamma=2.0, smooth=1e-5,
               size_average=True, target_block_bytes=2 * 1024 * 1024):
    """Focal loss matching the PyTorch module (apply_nonlin=None, alpha=None)."""
    N = int(logit_nchw.shape[0])
    C = int(logit_nchw.shape[1])
    HW = 1
    for d in logit_nchw.shape[2:]:
        HW *= int(d)
    M = N * HW

    # Keep bf16 probabilities as-is (halves logit HBM traffic on v5e/v6e);
    # everything else is computed/accumulated in f32.
    if logit_nchw.dtype in (jnp.dtype(jnp.float32), jnp.dtype(jnp.bfloat16)):
        ldtype = jnp.dtype(logit_nchw.dtype)
    else:
        ldtype = jnp.dtype(jnp.float32)
    itemsize = ldtype.itemsize

    HW_pad = ((HW + _LANE - 1) // _LANE) * _LANE
    R = HW_pad // _LANE

    if HW_pad == HW:
        # Free row-major reshapes: NCHW -> (N, C, R, 128), target -> (N, 1, R, 128)
        logit4 = logit_nchw.reshape(N, C, R, _LANE).astype(ldtype)
        tgt4 = target.reshape(N, 1, R, _LANE).astype(jnp.int32)
    else:
        # Unaligned spatial size: one extra HBM pass to pad the pixel axis;
        # padded pixels are masked out in-kernel on the last block.
        pad = HW_pad - HW
        logit4 = jnp.pad(logit_nchw.reshape(N, C, HW).astype(ldtype),
                         ((0, 0), (0, 0), (0, pad))).reshape(N, C, R, _LANE)
        tgt4 = jnp.pad(target.reshape(N, 1, HW).astype(jnp.int32),
                       ((0, 0), (0, 0), (0, pad))).reshape(N, 1, R, _LANE)

    # VMEM-aware block sizing: ~2 MiB logit tile per pipeline buffer (accounts
    # for C), rows aligned to the sublane tiling of the logit dtype.
    row_align = 8 if itemsize == 4 else 16
    bs = target_block_bytes // (C * _LANE * itemsize)
    bs = max(row_align, (bs // row_align) * row_align)
    if R <= bs:
        bs = R                      # full pixel-row axis (exempt from /8 rule)
    grid_r = pl.cdiv(R, bs)

    # Parallel outer shard of the pixel-block axis so v7x's two TensorCores
    # are used even for small N; no-op on single-TC chips.
    if grid_r % 2 == 0 and grid_r >= 8:
        g_out, g_in = 2, grid_r // 2
    else:
        g_out, g_in = 1, grid_r

    need_mask = (HW_pad != HW) or (bs * grid_r != R)

    kernel = functools.partial(
        _focal_kernel,
        num_class=C,
        gamma=float(gamma),
        smooth=float(smooth),
        hw_total=int(HW),
        block_rows=int(bs),
        need_mask=bool(need_mask),
    )

    cost = pl.CostEstimate(
        flops=int((4 * C + 8) * N * HW),
        transcendentals=int(N * HW),
        bytes_accessed=int(N * HW * (C * itemsize + 4) + N * g_out * bs * _LANE * 4),
    )

    partials = pl.pallas_call(
        kernel,
        out_shape=jax.ShapeDtypeStruct((N, g_out, bs, _LANE), jnp.float32),
        grid_spec=pltpu.PrefetchScalarGridSpec(
            num_scalar_prefetch=0,
            grid=(N, g_out, g_in),
            in_specs=[
                pl.BlockSpec((None, C, bs, _LANE),
                             lambda n, ro, ri: (n, 0, ro * g_in + ri, 0)),
                pl.BlockSpec((None, None, bs, _LANE),
                             lambda n, ro, ri: (n, 0, ro * g_in + ri, 0)),
            ],
            out_specs=pl.BlockSpec((None, None, bs, _LANE),
                                   lambda n, ro, ri: (n, ro, 0, 0)),
        ),
        compiler_params=pltpu.CompilerParams(
            dimension_semantics=("parallel", "parallel", "arbitrary"),
        ),
        cost_estimate=cost,
    )(logit4, tgt4)

    total = jnp.sum(partials)        # tiny final reduce in plain JAX
    if size_average:
        return total / jnp.float32(M)
    return total


def _reference_focal_loss(logit_nchw, target, gamma=2.0, smooth=1e-5):
    # pure-JAX reference mirroring the PyTorch view/permute/view sequence
    N, C = logit_nchw.shape[0], logit_nchw.shape[1]
    logit2d = jnp.transpose(logit_nchw.reshape(N, C, -1), (0, 2, 1)).reshape(-1, C)
    tgt = target.reshape(-1).astype(jnp.int32)
    one_hot = jax.nn.one_hot(tgt, C, dtype=jnp.float32)
    one_hot = jnp.clip(one_hot, smooth / (C - 1), 1.0 - smooth)
    pt = jnp.sum(one_hot * logit2d.astype(jnp.float32), axis=1) + smooth
    logpt = jnp.log(pt)
    loss = -1.0 * jnp.power(1.0 - pt, gamma) * logpt
    return jnp.mean(loss)


if __name__ == "__main__":
    key = jax.random.PRNGKey(0)
    k1, k2 = jax.random.split(key)

    N, C, H, W = 2, 4, 16, 16
    # apply_nonlin is None in the module, so probabilities must be supplied as
    # the "logit" input; build them with a softmax over the class axis.
    raw = jax.random.normal(k1, (N, C, H, W), dtype=jnp.float32)
    logit = jax.nn.softmax(raw, axis=1)
    target = jax.random.randint(k2, (N, 1, H, W), 0, C, dtype=jnp.int32)

    loss = jax.block_until_ready(focal_loss(logit, target))
    ref = jax.block_until_ready(_reference_focal_loss(logit, target))
    assert jnp.allclose(loss, ref, rtol=1e-5, atol=1e-6), (loss, ref)

    print("KERNEL_OK")
</pallas_src>

<mosaic_0001>
module attributes {stable_mosaic.version = 11 : i64} {
  func.func @_focal_kernel(%arg0: i32, %arg1: i32, %arg2: i32, %arg3: memref<1x4x2x128xf32, #tpu.memory_space<vmem>>, %arg4: memref<1x1x2x128xi32, #tpu.memory_space<vmem>>, %arg5: memref<1x1x2x128xf32, #tpu.memory_space<vmem>>) attributes {dimension_semantics = [#tpu.dimension_semantics<parallel>, #tpu.dimension_semantics<parallel>, #tpu.dimension_semantics<arbitrary>], iteration_bounds = array<i64: 2, 1, 1>, scalar_prefetch = 0 : i64, scratch_operands = 0 : i64, tpu.core_type = #tpu.core_type<tc>, window_params = [{transform_indices = @transform_0, window_bounds = array<i64: 1, 4, 2, 128>}, {transform_indices = @transform_1, window_bounds = array<i64: 1, 1, 2, 128>}, {transform_indices = @transform_2, window_bounds = array<i64: 1, 1, 2, 128>}]} {
    %c0_i32 = arith.constant 0 : i32
    %0 = arith.cmpi eq, %arg2, %c0_i32 : i32
    %1 = arith.extui %0 : i1 to i32
    %c0_i32_0 = arith.constant 0 : i32
    %2 = arith.cmpi ne, %1, %c0_i32_0 : i32
    scf.if %2 {
      %cst_36 = arith.constant 0.000000e+00 : f32
      %55 = vector.broadcast %cst_36 : f32 to vector<2x128xf32>
      %c0_37 = arith.constant 0 : index
      %c0_38 = arith.constant 0 : index
      %c0_39 = arith.constant 0 : index
      %c0_40 = arith.constant 0 : index
      %56 = vector.load %arg5[%c0_37, %c0_38, %c0_39, %c0_40] : memref<1x1x2x128xf32, #tpu.memory_space<vmem>>, vector<1x1x2x128xf32>
      %57 = vector.shape_cast %56 : vector<1x1x2x128xf32> to vector<2x128xf32>
      %58 = vector.shape_cast %55 : vector<2x128xf32> to vector<1x1x2x128xf32>
      tpu.vector_store %arg5[%c0_37, %c0_38, %c0_39, %c0_40], %58 {strides = array<i32>} : memref<1x1x2x128xf32, #tpu.memory_space<vmem>>, vector<1x1x2x128xf32>,
    } else {
    }
    %c0 = arith.constant 0 : index
    %c0_1 = arith.constant 0 : index
    %c0_2 = arith.constant 0 : index
    %c0_3 = arith.constant 0 : index
    %3 = vector.load %arg4[%c0, %c0_1, %c0_2, %c0_3] : memref<1x1x2x128xi32, #tpu.memory_space<vmem>>, vector<1x1x2x128xi32>
    %4 = vector.shape_cast %3 : vector<1x1x2x128xi32> to vector<2x128xi32>
    %cst = arith.constant 9.99999974E-6 : f32
    %5 = vector.broadcast %cst : f32 to vector<2x128xf32>
    %c0_i32_4 = arith.constant 0 : i32
    %6 = vector.broadcast %c0_i32_4 : i32 to vector<2x128xi32>
    %7 = arith.cmpi eq, %4, %6 : vector<2x128xi32>
    %cst_5 = arith.constant 0.999989986 : f32
    %cst_6 = arith.constant 3.33333332E-6 : f32
    %8 = vector.broadcast %cst_5 : f32 to vector<2x128xf32>
    %9 = vector.broadcast %cst_6 : f32 to vector<2x128xf32>
    %10 = arith.select %7, %8, %9 : vector<2x128xi1>, vector<2x128xf32>
    %c0_7 = arith.constant 0 : index
    %c0_8 = arith.constant 0 : index
    %c0_9 = arith.constant 0 : index
    %c0_10 = arith.constant 0 : index
    %11 = vector.load %arg3[%c0_7, %c0_8, %c0_9, %c0_10] : memref<1x4x2x128xf32, #tpu.memory_space<vmem>>, vector<1x1x2x128xf32>
    %12 = vector.shape_cast %11 : vector<1x1x2x128xf32> to vector<2x128xf32>
    %13 = arith.mulf %10, %12 : vector<2x128xf32>
    %14 = arith.addf %5, %13 : vector<2x128xf32>
    %c1_i32 = arith.constant 1 : i32
    %15 = vector.broadcast %c1_i32 : i32 to vector<2x128xi32>
    %16 = arith.cmpi eq, %4, %15 : vector<2x128xi32>
    %cst_11 = arith.constant 0.999989986 : f32
    %cst_12 = arith.constant 3.33333332E-6 : f32
    %17 = vector.broadcast %cst_11 : f32 to vector<2x128xf32>
    %18 = vector.broadcast %cst_12 : f32 to vector<2x128xf32>
    %19 = arith.select %16, %17, %18 : vector<2x128xi1>, vector<2x128xf32>
    %c0_13 = arith.constant 0 : index
    %c1 = arith.constant 1 : index
    %c0_14 = arith.constant 0 : index
    %c0_15 = arith.constant 0 : index
    %20 = vector.load %arg3[%c0_13, %c1, %c0_14, %c0_15] : memref<1x4x2x128xf32, #tpu.memory_space<vmem>>, vector<1x1x2x128xf32>
    %21 = vector.shape_cast %20 : vector<1x1x2x128xf32> to vector<2x128xf32>
    %22 = arith.mulf %19, %21 : vector<2x128xf32>
    %23 = arith.addf %14, %22 : vector<2x128xf32>
    %c2_i32 = arith.constant 2 : i32
    %24 = vector.broadcast %c2_i32 : i32 to vector<2x128xi32>
    %25 = arith.cmpi eq, %4, %24 : vector<2x128xi32>
    %cst_16 = arith.constant 0.999989986 : f32
    %cst_17 = arith.constant 3.33333332E-6 : f32
    %26 = vector.broadcast %cst_16 : f32 to vector<2x128xf32>
    %27 = vector.broadcast %cst_17 : f32 to vector<2x128xf32>
    %28 = arith.select %25, %26, %27 : vector<2x128xi1>, vector<2x128xf32>
    %c0_18 = arith.constant 0 : index
    %c2 = arith.constant 2 : index
    %c0_19 = arith.constant 0 : index
    %c0_20 = arith.constant 0 : index
    %29 = vector.load %arg3[%c0_18, %c2, %c0_19, %c0_20] : memref<1x4x2x128xf32, #tpu.memory_space<vmem>>, vector<1x1x2x128xf32>
    %30 = vector.shape_cast %29 : vector<1x1x2x128xf32> to vector<2x128xf32>
    %31 = arith.mulf %28, %30 : vector<2x128xf32>
    %32 = arith.addf %23, %31 : vector<2x128xf32>
    %c3_i32 = arith.constant 3 : i32
    %33 = vector.broadcast %c3_i32 : i32 to vector<2x128xi32>
    %34 = arith.cmpi eq, %4, %33 : vector<2x128xi32>
    %cst_21 = arith.constant 0.999989986 : f32
    %cst_22 = arith.constant 3.33333332E-6 : f32
    %35 = vector.broadcast %cst_21 : f32 to vector<2x128xf32>
    %36 = vector.broadcast %cst_22 : f32 to vector<2x128xf32>
    %37 = arith.select %34, %35, %36 : vector<2x128xi1>, vector<2x128xf32>
    %c0_23 = arith.constant 0 : index
    %c3 = arith.constant 3 : index
    %c0_24 = arith.constant 0 : index
    %c0_25 = arith.constant 0 : index
    %38 = vector.load %arg3[%c0_23, %c3, %c0_24, %c0_25] : memref<1x4x2x128xf32, #tpu.memory_space<vmem>>, vector<1x1x2x128xf32>
    %39 = vector.shape_cast %38 : vector<1x1x2x128xf32> to vector<2x128xf32>
    %40 = arith.mulf %37, %39 : vector<2x128xf32>
    %41 = arith.addf %32, %40 : vector<2x128xf32>
    %42 = math.log %41 : vector<2x128xf32>
    %cst_26 = arith.constant 1.000000e+00 : f32
    %43 = vector.broadcast %cst_26 : f32 to vector<2x128xf32>
    %44 = arith.subf %43, %41 : vector<2x128xf32>
    %45 = arith.mulf %44, %44 : vector<2x128xf32>
    %cst_27 = arith.constant 0.000000e+00 : f32
    %46 = vector.broadcast %cst_27 : f32 to vector<2x128xf32>
    %47 = arith.subf %46, %45 : vector<2x128xf32>
    %48 = arith.mulf %47, %42 : vector<2x128xf32>
    %c0_28 = arith.constant 0 : index
    %c0_29 = arith.constant 0 : index
    %c0_30 = arith.constant 0 : index
    %c0_31 = arith.constant 0 : index
    %49 = vector.load %arg5[%c0_28, %c0_29, %c0_30, %c0_31] : memref<1x1x2x128xf32, #tpu.memory_space<vmem>>, vector<1x1x2x128xf32>
    %50 = vector.shape_cast %49 : vector<1x1x2x128xf32> to vector<2x128xf32>
    %51 = arith.addf %50, %48 : vector<2x128xf32>
    %c0_32 = arith.constant 0 : index
    %c0_33 = arith.constant 0 : index
    %c0_34 = arith.constant 0 : index
    %c0_35 = arith.constant 0 : index
    %52 = vector.load %arg5[%c0_32, %c0_33, %c0_34, %c0_35] : memref<1x1x2x128xf32, #tpu.memory_space<vmem>>, vector<1x1x2x128xf32>
    %53 = vector.shape_cast %52 : vector<1x1x2x128xf32> to vector<2x128xf32>
    %54 = vector.shape_cast %51 : vector<2x128xf32> to vector<1x1x2x128xf32>
    tpu.vector_store %arg5[%c0_32, %c0_33, %c0_34, %c0_35], %54 {strides = array<i32>} : memref<1x1x2x128xf32, #tpu.memory_space<vmem>>, vector<1x1x2x128xf32>,
    return
  }
  func.func @transform_0(%arg0: i32, %arg1: i32, %arg2: i32) -> (i32, i32, i32, i32) {
    %c1_i32 = arith.constant 1 : i32
    %0 = arith.muli %arg1, %c1_i32 : i32
    %1 = arith.addi %0, %arg2 : i32
    %c0_i32 = arith.constant 0 : i32
    %c0_i32_0 = arith.constant 0 : i32
    %c0_i32_1 = arith.constant 0 : i32
    return %arg0, %c0_i32, %1, %c0_i32_0 : i32, i32, i32, i32
  }
  func.func @transform_1(%arg0: i32, %arg1: i32, %arg2: i32) -> (i32, i32, i32, i32) {
    %c1_i32 = arith.constant 1 : i32
    %0 = arith.muli %arg1, %c1_i32 : i32
    %1 = arith.addi %0, %arg2 : i32
    %c0_i32 = arith.constant 0 : i32
    %c0_i32_0 = arith.constant 0 : i32
    %c0_i32_1 = arith.constant 0 : i32
    return %arg0, %c0_i32, %1, %c0_i32_0 : i32, i32, i32, i32
  }
  func.func @transform_2(%arg0: i32, %arg1: i32, %arg2: i32) -> (i32, i32, i32, i32) {
    %c0_i32 = arith.constant 0 : i32
    %c0_i32_0 = arith.constant 0 : i32
    %c0_i32_1 = arith.constant 0 : i32
    return %arg0, %arg1, %c0_i32, %c0_i32_0 : i32, i32, i32, i32
  }
}

</mosaic_0001>

<bundles_post_ra>
// kernel: tpu_custom_call.1
= control target key start
LH: loop header
LB: loop body
LE: loop exit
PB: predicated region body
PF: predicated region fallthrough
CT: control target
= control target key end

     0   :  { %7 = vsyncpa [#allocation3], 0  ;;  %s882_s0 = inlined_call_operand.hbm [shape: f32[2,4,2,128], index: 0, kind: input, shape index: {}]   ;;  %s883_s1 = inlined_call_operand.hbm [shape: s32[2,1,2,128], index: 1, kind: input, shape index: {}]   ;;  %s884_s2 = inlined_call_operand.hbm [shape: f32[2,1,2,128], index: 2, kind: output, shape index: {}]  }
   0x1   :  { %9 = vsyncpa [#allocation3 + $0x1], 0 }
   0x2   :  { %10 = vsyncpa [#allocation6], 0 }
   0x3   :  { %12 = vsyncpa [#allocation6 + $0x1], 0 }
   0x4   :  { %13 = vsyncpa [#allocation4], 0 }
   0x5   :  { %15 = vsyncpa [#allocation4 + $0x1], 0  ;;  %s661_s9 = smov 0   ;;  %s663_s10 = smov 0  }
   0x6   :  { %s665_s11 = smov 0   ;;  %s667_s12 = smov 0  }
   0x7   :  { %s669_s13 = smov 0   ;;  %s671_s14 = smov 0  }
   0x8 LB: > { %s397_s15 = sadd.s32 4294967295, %s637_s14   ;;  %s398_s16 = sadd.s32 4294967294, %s637_s14   ;;  %s637_s14 = sphi %s671_s14, %s21_s14   ;;  %s633_s13 = sphi %s669_s13, %s903_s13   ;;  %s629_s12 = sphi %s667_s12, %s902_s12   ;;  %s625_s11 = sphi %s665_s11, %s901_s11   ;;  %s621_s10 = sphi %s663_s10, %s900_s10   ;;  %s617_s9 = sphi %s661_s9, %s899_s9  }
   0x9   : > { %s40_s17 = sadd.s32 1, %s633_s13  ;;  %s51_s18 = sadd.s32 1, %s625_s11 }
   0xa   : > { %p42_p0 = scmp.ge.s32.totalorder %s40_s17, 2  ;;  %p58_p1 = scmp.ne.s32.totalorder %s625_s11, %s621_s10 }
   0xb   : > { %p59_p2 = scmp.eq.s32.totalorder %s637_s14, 0  ;;  %p64_p3 = scmp.ne.s32.totalorder %s621_s10, %s617_s9 }
   0xc   : > { %s905_s17 = smov (%p42_p0, %s40_s17), 0  ;;  %p65_p5 = scmp.eq.s32.totalorder %s397_s15, 0 }
   0xd   : > { %p702_p4 = por %p59_p2, %p58_p1  ;;  %s46_s20 = ssub.s32 %s633_s13, %s905_s17 }
   0xe   : > { %p120_p6 = scmp.eq.s32.totalorder %s397_s15, 1  ;;  %p49_p7 = scmp.eq.s32.totalorder %s46_s20, 0 }
   0xf   : > { %p708_p8 = por %p65_p5, %p64_p3  ;;  %p126_p10 = scmp.eq.s32.totalorder %s398_s16, 1 }
  0x10   : > { %p712_p9 = por %p120_p6, %p58_p1  ;;  %p435_p13 = scmp.lt.s32.totalorder %s637_s14, 2 }
  0x11   : > { %s888_s21 = scalar_select %p708_p8, 1, 0 }
  0x12   : > { %s889_s22 = scalar_select %p712_p9, 1, 0 }
  0x13   : > { %s717_s23 = scalar_select %p49_p7, %s625_s11, %s51_s18  }
  0x14   : > { %p719_p11 = por %p126_p10, %p64_p3  ;;  %s726_s25 = sand.u32 1, %s625_s11  }
  0x15   : > { %s401_s26 = sshll.u32 %s726_s25, 3  ;;  %s417_s27 = sshll.u32 %s633_s13, 7 }
  0x16   : > { %s890_s24 = scalar_select %p719_p11, 1, 0 }
  0x17   : > { %s733_s30 = scalar_lea.hbm %s882_s0, %s417_s27  ;;  %s150_s3 = scalar_lea.vmem [#allocation2], %s401_s26 }
  0x18   : > { %s159_s4 = sshll.u32 %s150_s3, 4  ;;  %p739_p0 = pnand %p435_p13, %p702_p4  ;;  %s735_s4 = int_to_ptr.vmem [resolvable:$true] %s159_s4 }
  0x19   : > { %s147_s6 = scalar_lea.sflag [#allocation3], %s726_s25  ;;  %s491_s7 = scalar_lea.hbm %s733_s30, 128 }
  0x1a   : > { %p492_p2 = scmp.ne.s32.totalorder %s733_s30, %s491_s7  ;;  %p493_p3 = pneg %p739_p0 }
  0x1b   : > { %s496_s16 = scalar_lea.hbm %s882_s0, 256  ;;  %p497_p4 = scmp.lt.u32.totalorder %s733_s30, %s882_s0 }
  0x1c   : > { %p494_p5 = pnand %p493_p3, %p492_p2  ;;  %p498_p7 = scmp.lt.u32.totalorder %s496_s16, %s491_s7 }
  0x1d   : > { %p500_p13 = scmp.lt.u32.totalorder %s491_s7, %s733_s30 }
  0x1e   : > { %p495_p6 = pneg %p494_p5  ;;  %p499_p10 = por %p498_p7, %p497_p4 }
  0x20   : > { %p501_p12 = por %p500_p13, %p499_p10 }
  0x22   : > { %p502_p1 = pnand %p501_p12, %p495_p6 }
  0x24   : > { %505 = shalt.err (!%p502_p1)
}
  0x25   : > { %s506_s20 = scalar_lea.vmem %s735_s4, 128  ;;  %s639_s26 = smov [#allocation2]  }
  0x26   : > { %p507_p2 = scmp.ne.s32.totalorder %s735_s4, %s506_s20  ;;  %s511_s27 = sshll.u32 %s639_s26, 4  ;;  %s512_s27 = int_to_ptr.vmem [resolvable:$false] %s511_s27 }
  0x27   : > { %s513_s28 = scalar_lea.vmem %s512_s27, 256  ;;  %p514_p9 = scmp.lt.s32.totalorder %s735_s4, %s512_s27 }
  0x28   : > { %p509_p5 = pnand %p507_p2, %p493_p3  ;;  %p515_p4 = scmp.lt.s32.totalorder %s513_s28, %s506_s20 }
  0x2a   : > { %p510_p11 = pneg %p509_p5  ;;  %p516_p7 = por %p515_p4, %p514_p9 }
  0x2c   : > { %p517_p10 = pnand %p516_p7, %p510_p11 }
  0x2e   : > { %520 = shalt.err (!%p517_p10)
}
  0x2f   : > { %s640_s29 = smov 32   ;;  %s641_s3 = smov 2  }
  0x30   : > { %427 = dma.hbm_to_vmem [thread:$0]  (!%p739_p0), %s733_s30, 128, %s735_s4, %s147_s6, %s640_s29, %s640_s29, %s641_s3  }
  0x31   : > { %p187_p12 = scmp.lt.s32.totalorder %s637_s14, 3  ;;  %s404_s7 = sshll.u32 %s726_s25, 1 }
  0x32   : > { %s405_s8 = sshll.u32 %s633_s13, 5  ;;  %p892_p9 = scmp.ge.s32.totalorder %s637_s14, 1 }
  0x33   : > { %s784_s19 = scalar_lea.hbm %s883_s1, %s405_s8  ;;  %s173_s20 = scalar_lea.vmem [#allocation5], %s404_s7 }
  0x34   : > { %p777_p11 = pnand %p892_p9, %p187_p12  ;;  %s182_s26 = sshll.u32 %s173_s20, 4  ;;  %s183_s26 = int_to_ptr.vmem [resolvable:$true] %s182_s26 }
  0x35   : > { %s170_s30 = scalar_lea.sflag [#allocation6], %s726_s25  ;;  %s521_s4 = scalar_lea.hbm %s784_s19, 32 }
  0x36   : > { %s893_s15 = scalar_select %p777_p11, 1, 0 }
  0x37   : > { %p522_p1 = scmp.ne.s32.totalorder %s784_s19, %s521_s4  ;;  %s526_s28 = scalar_lea.hbm %s883_s1, 64 }
  0x38   : > { %p527_p2 = scmp.lt.u32.totalorder %s784_s19, %s883_s1  ;;  %p528_p5 = scmp.lt.u32.totalorder %s526_s28, %s521_s4 }
  0x39   : > { %p524_p6 = pnand %p522_p1, %p493_p3  ;;  %p530_p7 = scmp.lt.u32.totalorder %s521_s4, %s784_s19 }
  0x3a   : > { %p529_p4 = por %p528_p5, %p527_p2 }
  0x3b   : > { %p525_p13 = pneg %p524_p6 }
  0x3c   : > { %p531_p10 = por %p530_p7, %p529_p4 }
  0x3e   : > { %p532_p12 = pnand %p531_p10, %p525_p13 }
  0x40   : > { %535 = shalt.err (!%p532_p12)
}
  0x41   : > { %s536_s25 = scalar_lea.vmem %s183_s26, 32  ;;  %s642_s7 = smov [#allocation5]  }
  0x42   : > { %p537_p9 = scmp.ne.s32.totalorder %s183_s26, %s536_s25  ;;  %s541_s8 = sshll.u32 %s642_s7, 4  ;;  %s542_s8 = int_to_ptr.vmem [resolvable:$false] %s541_s8 }
  0x43   : > { %s543_s16 = scalar_lea.vmem %s542_s8, 64  ;;  %p544_p8 = scmp.lt.s32.totalorder %s183_s26, %s542_s8 }
  0x44   : > { %p539_p1 = pnand %p537_p9, %p493_p3  ;;  %p545_p11 = scmp.lt.s32.totalorder %s543_s16, %s536_s25 }
  0x46   : > { %p540_p6 = pneg %p539_p1  ;;  %p546_p2 = por %p545_p11, %p544_p8 }
  0x48   : > { %p547_p5 = pnand %p546_p2, %p540_p6 }
  0x4a   : > { %550 = shalt.err (!%p547_p5)
}
  0x4b   : > { %430 = dma.hbm_to_vmem [thread:$0]  (!%p739_p0), %s784_s19, 32, %s183_s26, %s170_s30  }
  0x4c   : > { %p894_p13 = scmp.ne.s32.totalorder %s893_s15, 0 }
  0x4d   : > { %s809_s18 = sand.u32 (!%p894_p13), 1, %s621_s10   ;;  %p895_p3 = scmp.ne.s32.totalorder (!%p894_p13), %s888_s21, 0 }
  0x4e   : > { %191 = sbr.rel (%p894_p13) target bundleno = 135 (0x87), region = 28  ;;  %s407_s20 = sshll.u32 (!%p894_p13), %s809_s18, 3 }
  0x4f   : > { %s194_s4 = scalar_lea.sflag (!%p894_p13), [#allocation3], %s809_s18  ;;  %s197_s6 = scalar_lea.vmem (!%p894_p13), [#allocation2], %s407_s20 }
  0x55   : > { %604 = dma.done.wait (%p895_p3), %s194_s4, 128  }
  0x56   : > { %606 = vsyncadd (%p895_p3), %s194_s4, 4294967168  ;;  %s408_s5 = sshll.u32 %s809_s18, 1  ;;  %s203_s15 = scalar_lea.sflag [#allocation6], %s809_s18 }
  0x57   : > { %s206_s19 = scalar_lea.vmem [#allocation5], %s408_s5 }
  0x58   : > { %608 = dma.done.wait (%p895_p3), %s203_s15, 32  }
  0x59   : > { %610 = vsyncadd (%p895_p3), %s203_s15, 4294967264  ;;  %s823_s26 = scalar_lea.vmem [#allocation7], %s408_s5  ;;  %v643_v0 = vmov 0.0   ;;  %v239_v1 = vld [vmem:[%s206_s19] sm:$0x3]  ;;  %s414_s21 = sshll.u32 %s629_s12, 5 }
  0x5a   : > { %238 = vst [vmem:[%s823_s26] sm:$0x3] %v643_v0  ;;  %v242_v2 = vld [vmem:[%s197_s6] sm:$0x3]  ;;  %v410_v3 = vld [vmem:[%s197_s6 + $0x2] sm:$0x3]  ;;  %vm240_vm0 = vcmp.eq.s32.totalorder %v239_v1, 0  ;;  %s832_s29 = scalar_lea.hbm %s884_s2, %s414_s21 }
  0x5b   : > { %vm245_vm1 = vcmp.eq.s32.totalorder %v239_v1, 1  ;;  %vm251_vm2 = vcmp.eq.s32.totalorder %v239_v1, 2  ;;  %v411_v4 = vld [vmem:[%s197_s6 + $0x4] sm:$0x3]  ;;  %vm257_vm3 = vcmp.eq.s32.totalorder %v239_v1, 3  ;;  %s287_s30 = sshll.u32 %s823_s26, 4  ;;  %s834_s30 = int_to_ptr.vmem [resolvable:$true] %s287_s30 }
  0x5c   : > { %v644_v5 = vmov 3.3333333e-06   ;;  %v412_v12 = vld [vmem:[%s197_s6 + $0x6] sm:$0x3]  ;;  %s273_s3 = scalar_lea.sflag [#allocation4], %s809_s18  ;;  %s551_s25 = scalar_lea.vmem %s834_s30, 32 }
  0x5d   : > { %v241_v6 = vsel %vm240_vm0, 0.99999, %v644_v5  ;;  %v246_v7 = vsel %vm245_vm1, 0.99999, %v644_v5  ;;  %v252_v8 = vsel %vm251_vm2, 0.99999, %v644_v5  ;;  %p552_p8 = scmp.ne.s32.totalorder %s834_s30, %s551_s25 }
  0x5e   : > { %v243_v9 = vmul.f32 %v242_v2, %v241_v6  ;;  %v249_v10 = vmul.f32 %v410_v3, %v246_v7  ;;  %v258_v11 = vsel %vm257_vm3, 0.99999, %v644_v5  ;;  %v255_v14 = vmul.f32 %v411_v4, %v252_v8  ;;  %p896_p0 = scmp.ne.s32.totalorder %s889_s22, 0  ;;  %s645_s12 = smov [#allocation7]  }
  0x5f   : > { %v261_v16 = vmul.f32 %v412_v12, %v258_v11  ;;  %s555_s7 = sshll.u32 %s645_s12, 4  ;;  %s556_s7 = int_to_ptr.vmem [resolvable:$false] %s555_s7 }
  0x60   : > { %v244_v13 = vadd.f32 1e-05, %v243_v9  ;;  %p553_p11 = pnand %p552_p8, %p896_p0  ;;  %s557_s8 = scalar_lea.vmem %s556_s7, 64 }
  0x61   : > { %v269_v24 = vld [vmem:[%s823_s26] sm:$0x3]  ;;  %p558_p7 = scmp.lt.s32.totalorder %s834_s30, %s556_s7  ;;  %p559_p10 = scmp.lt.s32.totalorder %s557_s8, %s551_s25 }
  0x62   : > { %v250_v15 = vadd.f32 %v249_v10, %v244_v13  ;;  %p554_p4 = pneg %p553_p11 }
  0x63   : > { %p560_p12 = por %p559_p10, %p558_p7 }
  0x64   : > { %v256_v17 = vadd.f32 %v255_v14, %v250_v15 }
  0x65   : > { %p561_p9 = pnand %p560_p12, %p554_p4 }
  0x66   : > { %v262_v18 = vadd.f32 %v261_v16, %v256_v17 }
  0x68   : > { %489 = vlog2.f32 %v262_v18  ;;  %v265_v19 = vsub.f32 1.0, %v262_v18 }
  0x6a   : > { %v266_v20 = vmul.f32 %v265_v19, %v265_v19 }
  0x6c   : > { %v267_v21 = vsub.f32 0.0, %v266_v20 }
  0x72   : > { %v490_v22 = vpop.eup %489 }
  0x73   : > { %v264_v23 = vmul.f32 0.6931472, %v490_v22 }
  0x75   : > { %v268_v25 = vmul.f32 %v267_v21, %v264_v23 }
  0x77   : > { %v270_v26 = vadd.f32 %v269_v24, %v268_v25 }
  0x79   : > { %271 = vst [vmem:[%s823_s26] sm:$0x3] %v270_v26 }
  0x7a   : > { %564 = shalt.err (!%p561_p9)
}
  0x7b   : > { %s565_s16 = scalar_lea.hbm %s832_s29, 32  ;;  %s569_s4 = scalar_lea.hbm %s884_s2, 64 }
  0x7c   : > { %p566_p1 = scmp.ne.s32.totalorder %s832_s29, %s565_s16  ;;  %p570_p5 = scmp.lt.u32.totalorder %s832_s29, %s884_s2 }
  0x7d   : > { %p571_p13 = scmp.lt.u32.totalorder %s569_s4, %s565_s16  ;;  %p573_p8 = scmp.lt.u32.totalorder %s565_s16, %s832_s29 }
  0x7e   : > { %p567_p6 = pnand %p566_p1, %p896_p0 }
  0x7f   : > { %p572_p3 = por %p571_p13, %p570_p5 }
  0x80   : > { %p568_p2 = pneg %p567_p6 }
  0x81   : > { %p574_p11 = por %p573_p8, %p572_p3 }
  0x83   : > { %p575_p4 = pnand %p574_p11, %p568_p2 }
  0x85   : > { %578 = shalt.err (!%p575_p4)
}
  0x86   : > { %422 = dma.vmem_to_hbm [thread:$0]  (%p896_p0), %s834_s30, 32, %s832_s29, %s273_s3  }
  0x87 PF: > { %s299_s15 = sand.u32 1, %s617_s9   ;;  %p897_p7 = scmp.ne.s32.totalorder %s890_s24, 0 }
  0x88   : > { %p898_p10 = scmp.ge.s32.totalorder %s637_s14, 2  ;;  %s300_s19 = scalar_lea.sflag [#allocation4], %s299_s15 }
  0x8a   : > { %p432_p12 = pnand %p898_p10, %p897_p7 }
  0x8c   : > { %612 = dma.done.wait (!%p432_p12), %s300_s19, 32  }
  0x8d   : > { %614 = vsyncadd (!%p432_p12), %s300_s19, 4294967264  ;;  %s21_s14 = sadd.s32 1, %s637_s14   ;;  %s899_s9 = smov %s621_s10 }
  0x8e   : > { %p18_p9 = scmp.ge.s32.totalorder %s21_s14, 4   ;;  %s900_s10 = smov %s625_s11 }
  0x8f   : > { %s901_s11 = smov %s717_s23  ;;  %s902_s12 = smov %s633_s13 }
  0x90   : > { %s903_s13 = smov %s905_s17  ;;  %20 = sbr.rel (!%p18_p9) target bundleno = 8 (0x8), region = 93 }
  0x97   :  { %305 = vsyncpa [#allocation3], 1 }
  0x98   :  { %307 = vsyncpa [#allocation3 + $0x1], 1 }
  0x99   :  { %308 = vsyncpa [#allocation6], 1 }
  0x9a   :  { %310 = vsyncpa [#allocation6 + $0x1], 1 }
  0x9b   :  { %311 = vsyncpa [#allocation4], 1 }
  0x9c   :  { %313 = vsyncpa [#allocation4 + $0x1], 1 }

</bundles_post_ra>
